<compile_context>
chip_gen: v7x
topology: tpu7x:2x2x1
jax: 0.10.0
libtpu: 0.0.40
codegen_flags: <defaults>
</compile_context>

<pallas_src>
import functools

import jax
import jax.numpy as jnp
from jax.experimental import pallas as pl
from jax.experimental.pallas import tpu as pltpu

EPS = 1e-6


def _round_up(a, b):
    return ((a + b - 1) // b) * b


def _spec(shape, index_map, buffers=None):
    """BlockSpec with an optional explicit buffer count (falls back if unsupported)."""
    if buffers is None:
        return pl.BlockSpec(shape, index_map)
    try:
        return pl.BlockSpec(shape, index_map, pipeline_mode=pl.Buffered(buffers))
    except TypeError:  # older jax without pipeline_mode: default double-buffering
        return pl.BlockSpec(shape, index_map)


def _vmem_estimate(tm, tn, dp, grid_n, itemsize):
    w_buf = 1 if grid_n == 1 else 2
    return (2 * tm * dp * itemsize      # x tile (double-buffered)
            + 2 * tm * tn * itemsize    # out tile (double-buffered)
            + tm * dp * 2               # normed scratch (bf16)
            + w_buf * dp * tn * 2       # W block(s) (bf16)
            + 2 * dp * 4                # a2 + b2 (single-buffered)
            + w_buf * tn * 4)           # bias block(s)


def sublayer_connection_kernel(x_ref, a2_ref, b2_ref, w_ref, bias_ref, o_ref,
                               normed_ref, *, d_valid):
    j = pl.program_id(1)
    tn = o_ref.shape[-1]
    d_pad = x_ref.shape[-1]

    # LayerNorm once per row tile (first column step), cached as the bf16 MXU LHS.
    @pl.when(j == 0)
    def _():
        xf = x_ref[...].astype(jnp.float32)              # [TM, Dp] f32 (statistics only)
        a2 = a2_ref[...].astype(jnp.float32)             # [1, Dp]
        b2 = b2_ref[...].astype(jnp.float32)             # [1, Dp]
        # Annotated-Transformer semantics: std uses Bessel (ddof=1), eps added to std.
        mean = jnp.sum(xf, axis=-1, keepdims=True) * (1.0 / d_valid)
        centered = xf - mean
        if d_pad != d_valid:   # exclude zero-padded lanes from the variance
            lane = jax.lax.broadcasted_iota(jnp.int32, centered.shape, 1)
            cv = jnp.where(lane < d_valid, centered, 0.0)
        else:
            cv = centered
        var_unbiased = jnp.sum(cv * cv, axis=-1, keepdims=True) * (1.0 / (d_valid - 1))
        inv = pl.reciprocal(jnp.sqrt(var_unbiased) + EPS, approx=False)  # exact; EUP idle
        # padded lanes of a2/b2 are zero -> padded lanes of normed are exactly zero.
        normed_ref[...] = ((centered * inv) * a2 + b2).astype(jnp.bfloat16)

    # sublayer(norm(x)) = normed @ W[:, j*TN:(j+1)*TN] + bias ; MXU bf16 in, f32 accumulate.
    sub = jnp.dot(normed_ref[...], w_ref[...], preferred_element_type=jnp.float32)
    sub = sub + bias_ref[...].astype(jnp.float32)        # [TM, TN] f32

    # Residual add in f32, single cast to output dtype (dropout = identity in eval mode).
    if tn == d_pad:
        x_res = x_ref[...].astype(jnp.float32)
    else:
        col = pl.multiple_of(j * tn, tn)
        x_res = x_ref[:, pl.ds(col, tn)].astype(jnp.float32)
    o_ref[...] = (x_res + sub).astype(o_ref.dtype)


def sublayer_connection(x, a2, b2, w, bias, *, tm=512, tn=512):
    """x: [M, D]; a2, b2, bias: [D]; w: [D, D]. Returns x + (LN(x) @ w + bias)."""
    M, D = x.shape
    itemsize = jnp.dtype(x.dtype).itemsize

    # --- lane-dense hidden: pad D up to a multiple of 128 (zero padding) ---------------
    Dp = _round_up(D, 128)
    if Dp != D:
        x = jnp.pad(x, ((0, 0), (0, Dp - D)))
        a2 = jnp.pad(a2, (0, Dp - D))
        b2 = jnp.pad(b2, (0, Dp - D))
        bias = jnp.pad(bias, (0, Dp - D))
        w = jnp.pad(w, ((0, Dp - D), (0, Dp - D)))

    a2_2d = a2.reshape(1, Dp)
    b2_2d = b2.reshape(1, Dp)
    bias_2d = bias.reshape(1, Dp)
    w_bf16 = w.astype(jnp.bfloat16)   # MXU-native weight

    # --- generation-aware VMEM budget (leave ~25% headroom for Mosaic scratch) ---------
    try:
        vmem_cap = int(getattr(pltpu.get_tpu_info(), "vmem_capacity_bytes", 64 << 20))
    except Exception:
        vmem_cap = 64 << 20
    vmem_budget = (vmem_cap * 3) // 4       # ~48 MiB on v7x, ~96 MiB on v5e/v6e

    # --- row tiling: >= 2 grid steps (megacore), sublane-aligned -------------------------
    if M <= 8:
        TM = M
    else:
        TM = min(tm, _round_up(pl.cdiv(M, 2), 8))

    # --- column tiling: keep W fully resident unless it blows the VMEM budget ----------
    TN = Dp
    if _vmem_estimate(TM, TN, Dp, 1, itemsize) > vmem_budget:
        TN = min(Dp, max(512, _round_up(tn, 128)))
    grid_n = pl.cdiv(Dp, TN)

    # --- shrink the row tile if still over budget ---------------------------------------
    while _vmem_estimate(TM, TN, Dp, grid_n, itemsize) > vmem_budget and TM > 8:
        TM = max(8, _round_up(TM // 2, 8))
    grid_m = pl.cdiv(M, TM)

    resident_w = (grid_n == 1)
    vmem_limit = int(min(vmem_budget,
                         max(8 << 20, 2 * _vmem_estimate(TM, TN, Dp, grid_n, itemsize))))

    cost = pl.CostEstimate(
        flops=2 * M * Dp * Dp,
        transcendentals=2 * M,                             # one sqrt + one reciprocal per row
        bytes_accessed=int(2 * M * Dp * itemsize           # read x + write out
                           + (1 if resident_w else grid_m) * Dp * Dp * 2   # W (bf16)
                           + 3 * Dp * 4),                  # a2 / b2 / bias
    )

    kernel = functools.partial(sublayer_connection_kernel, d_valid=D)

    out = pl.pallas_call(
        kernel,
        out_shape=jax.ShapeDtypeStruct((M, Dp), x.dtype),
        grid_spec=pltpu.PrefetchScalarGridSpec(
            num_scalar_prefetch=0,
            grid=(grid_m, grid_n),
            in_specs=[
                _spec((TM, Dp), lambda i, j: (i, 0)),                       # x (rows)
                _spec((1, Dp), lambda i, j: (0, 0), buffers=1),             # a2 (resident)
                _spec((1, Dp), lambda i, j: (0, 0), buffers=1),             # b2 (resident)
                _spec((Dp, TN), lambda i, j: (0, j),
                      buffers=1 if resident_w else None),                   # W (bf16)
                _spec((1, TN), lambda i, j: (0, j),
                      buffers=1 if resident_w else None),                   # bias
            ],
            out_specs=pl.BlockSpec((TM, TN), lambda i, j: (i, j)),
            scratch_shapes=[pltpu.VMEM((TM, Dp), jnp.bfloat16)],            # cached LN(x)
        ),
        compiler_params=pltpu.CompilerParams(
            dimension_semantics=("parallel", "arbitrary"),
            vmem_limit_bytes=vmem_limit,
        ),
        cost_estimate=cost,
    )(x, a2_2d, b2_2d, w_bf16, bias_2d)

    return out[:, :D] if Dp != D else out


def reference(x, a2, b2, w, bias):
    d = x.shape[-1]
    x = x.astype(jnp.float32)
    mean = jnp.mean(x, axis=-1, keepdims=True)
    centered = x - mean
    std = jnp.sqrt(jnp.sum(centered**2, axis=-1, keepdims=True) / (d - 1))
    normed = a2 * centered / (std + EPS) + b2
    return x + (normed @ w + bias)


if __name__ == "__main__":
    key = jax.random.PRNGKey(0)
    batch, seq, hidden = 2, 8, 32

    kx, kw, kb = jax.random.split(key, 3)
    x = jax.random.normal(kx, (batch, seq, hidden), dtype=jnp.float32)

    # LayerNorm params (as in __init__: ones / zeros)
    a2 = jnp.ones((hidden,), dtype=jnp.float32)
    b2 = jnp.zeros((hidden,), dtype=jnp.float32)

    # Deterministic synthetic sublayer (Linear(size, size))
    w = jax.random.normal(kw, (hidden, hidden), dtype=jnp.float32) * 0.05
    bias = jax.random.normal(kb, (hidden,), dtype=jnp.float32) * 0.01

    x2d = x.reshape(batch * seq, hidden)
    out = sublayer_connection(x2d, a2, b2, w, bias)
    out = jax.block_until_ready(out)

    ref = reference(x2d, a2, b2, w, bias)
    assert out.shape == (batch * seq, hidden)
    # bf16 MXU operands (f32 accumulate); LN statistics and residual add are exact f32.
    assert jnp.allclose(out, ref, atol=1e-2, rtol=1e-2), "mismatch vs reference"

    out3d = out.reshape(batch, seq, hidden)  # back to [B, S, D]
    print("KERNEL_OK")
</pallas_src>

<mosaic_0001>
module attributes {stable_mosaic.version = 11 : i64} {
  func.func @sublayer_connection_kernel(%arg0: i32, %arg1: i32, %arg2: memref<8x128xf32, #tpu.memory_space<vmem>>, %arg3: memref<1x128xf32, #tpu.memory_space<vmem>>, %arg4: memref<1x128xf32, #tpu.memory_space<vmem>>, %arg5: memref<128x128xbf16, #tpu.memory_space<vmem>>, %arg6: memref<1x128xf32, #tpu.memory_space<vmem>>, %arg7: memref<8x128xf32, #tpu.memory_space<vmem>>, %arg8: memref<8x128xbf16, #tpu.memory_space<vmem>>) attributes {dimension_semantics = [#tpu.dimension_semantics<parallel>, #tpu.dimension_semantics<arbitrary>], iteration_bounds = array<i64: 2, 1>, scalar_prefetch = 0 : i64, scratch_operands = 1 : i64, tpu.core_type = #tpu.core_type<tc>, window_params = [{transform_indices = @transform_0, window_bounds = array<i64: 8, 128>}, {pipeline_mode = #tpu.pipeline_mode<synchronous>, transform_indices = @transform_1, window_bounds = array<i64: 1, 128>}, {pipeline_mode = #tpu.pipeline_mode<synchronous>, transform_indices = @transform_2, window_bounds = array<i64: 1, 128>}, {pipeline_mode = #tpu.pipeline_mode<synchronous>, transform_indices = @transform_3, window_bounds = array<i64: 128, 128>}, {pipeline_mode = #tpu.pipeline_mode<synchronous>, transform_indices = @transform_4, window_bounds = array<i64: 1, 128>}, {transform_indices = @transform_5, window_bounds = array<i64: 8, 128>}]} {
    %c0_i32 = arith.constant 0 : i32
    %0 = arith.cmpi eq, %arg1, %c0_i32 : i32
    %1 = arith.extui %0 : i1 to i32
    %c0_i32_0 = arith.constant 0 : i32
    %2 = arith.cmpi ne, %1, %c0_i32_0 : i32
    scf.if %2 {
      %c0_10 = arith.constant 0 : index
      %c0_11 = arith.constant 0 : index
      %12 = vector.load %arg2[%c0_10, %c0_11] : memref<8x128xf32, #tpu.memory_space<vmem>>, vector<8x128xf32>
      %c0_12 = arith.constant 0 : index
      %c0_13 = arith.constant 0 : index
      %13 = vector.load %arg3[%c0_12, %c0_13] : memref<1x128xf32, #tpu.memory_space<vmem>>, vector<1x128xf32>
      %c0_14 = arith.constant 0 : index
      %c0_15 = arith.constant 0 : index
      %14 = vector.load %arg4[%c0_14, %c0_15] : memref<1x128xf32, #tpu.memory_space<vmem>>, vector<1x128xf32>
      %cst_16 = arith.constant dense<0.000000e+00> : vector<8xf32>
      %15 = vector.multi_reduction <add>, %12, %cst_16 [1] : vector<8x128xf32> to vector<8xf32>
      %16 = vector.shape_cast %15 : vector<8xf32> to vector<8x1xf32>
      %cst_17 = arith.constant 3.125000e-02 : f32
      %17 = vector.broadcast %cst_17 : f32 to vector<8x1xf32>
      %18 = arith.mulf %16, %17 : vector<8x1xf32>
      %19 = vector.broadcast %18 : vector<8x1xf32> to vector<8x128xf32>
      %20 = arith.subf %12, %19 : vector<8x128xf32>
      %21 = tpu.iota {dimensions = array<i32: 1>} : vector<8x128xi32>
      %c32_i32 = arith.constant 32 : i32
      %22 = vector.broadcast %c32_i32 : i32 to vector<8x128xi32>
      %23 = arith.cmpi slt, %21, %22 : vector<8x128xi32>
      %cst_18 = arith.constant 0.000000e+00 : f32
      %24 = vector.broadcast %cst_18 : f32 to vector<8x128xf32>
      %25 = arith.select %23, %20, %24 : vector<8x128xi1>, vector<8x128xf32>
      %26 = arith.mulf %25, %25 : vector<8x128xf32>
      %cst_19 = arith.constant dense<0.000000e+00> : vector<8xf32>
      %27 = vector.multi_reduction <add>, %26, %cst_19 [1] : vector<8x128xf32> to vector<8xf32>
      %28 = vector.shape_cast %27 : vector<8xf32> to vector<8x1xf32>
      %cst_20 = arith.constant 0.0322580636 : f32
      %29 = vector.broadcast %cst_20 : f32 to vector<8x1xf32>
      %30 = arith.mulf %28, %29 : vector<8x1xf32>
      %31 = math.sqrt %30 : vector<8x1xf32>
      %cst_21 = arith.constant 9.99999997E-7 : f32
      %32 = vector.broadcast %cst_21 : f32 to vector<8x1xf32>
      %33 = arith.addf %31, %32 : vector<8x1xf32>
      %34 = tpu.reciprocal %33 : vector<8x1xf32> -> vector<8x1xf32>
      %35 = vector.broadcast %34 : vector<8x1xf32> to vector<8x128xf32>
      %36 = arith.mulf %20, %35 : vector<8x128xf32>
      %37 = vector.broadcast %13 : vector<1x128xf32> to vector<8x128xf32>
      %38 = arith.mulf %36, %37 : vector<8x128xf32>
      %39 = vector.broadcast %14 : vector<1x128xf32> to vector<8x128xf32>
      %40 = arith.addf %38, %39 : vector<8x128xf32>
      %41 = arith.truncf %40 : vector<8x128xf32> to vector<8x128xbf16>
      %c0_22 = arith.constant 0 : index
      %c0_23 = arith.constant 0 : index
      %42 = vector.load %arg8[%c0_22, %c0_23] : memref<8x128xbf16, #tpu.memory_space<vmem>>, vector<8x128xbf16>
      tpu.vector_store %arg8[%c0_22, %c0_23], %41 {strides = array<i32>} : memref<8x128xbf16, #tpu.memory_space<vmem>>, vector<8x128xbf16>,
    } else {
    }
    %c0 = arith.constant 0 : index
    %c0_1 = arith.constant 0 : index
    %3 = vector.load %arg8[%c0, %c0_1] : memref<8x128xbf16, #tpu.memory_space<vmem>>, vector<8x128xbf16>
    %c0_2 = arith.constant 0 : index
    %c0_3 = arith.constant 0 : index
    %4 = vector.load %arg5[%c0_2, %c0_3] : memref<128x128xbf16, #tpu.memory_space<vmem>>, vector<128x128xbf16>
    %cst = arith.constant dense<0.000000e+00> : vector<8x128xf32>
    %5 = tpu.matmul %3, %4, %cst {dimension_numbers = #tpu.dot_dimension_numbers<[1], [0], [0], [1], [0, 0, 1, 1], [], []>} : vector<8x128xbf16>, vector<128x128xbf16>, vector<8x128xf32> -> vector<8x128xf32>
    %c0_4 = arith.constant 0 : index
    %c0_5 = arith.constant 0 : index
    %6 = vector.load %arg6[%c0_4, %c0_5] : memref<1x128xf32, #tpu.memory_space<vmem>>, vector<1x128xf32>
    %7 = vector.broadcast %6 : vector<1x128xf32> to vector<8x128xf32>
    %8 = arith.addf %5, %7 : vector<8x128xf32>
    %c0_6 = arith.constant 0 : index
    %c0_7 = arith.constant 0 : index
    %9 = vector.load %arg2[%c0_6, %c0_7] : memref<8x128xf32, #tpu.memory_space<vmem>>, vector<8x128xf32>
    %10 = arith.addf %9, %8 : vector<8x128xf32>
    %c0_8 = arith.constant 0 : index
    %c0_9 = arith.constant 0 : index
    %11 = vector.load %arg7[%c0_8, %c0_9] : memref<8x128xf32, #tpu.memory_space<vmem>>, vector<8x128xf32>
    tpu.vector_store %arg7[%c0_8, %c0_9], %10 {strides = array<i32>} : memref<8x128xf32, #tpu.memory_space<vmem>>, vector<8x128xf32>,
    return
  }
  func.func @transform_0(%arg0: i32, %arg1: i32) -> (i32, i32) {
    %c0_i32 = arith.constant 0 : i32
    %c0_i32_0 = arith.constant 0 : i32
    return %arg0, %c0_i32 : i32, i32
  }
  func.func @transform_1(%arg0: i32, %arg1: i32) -> (i32, i32) {
    %c0_i32 = arith.constant 0 : i32
    %c0_i32_0 = arith.constant 0 : i32
    %c0_i32_1 = arith.constant 0 : i32
    return %c0_i32, %c0_i32_0 : i32, i32
  }
  func.func @transform_2(%arg0: i32, %arg1: i32) -> (i32, i32) {
    %c0_i32 = arith.constant 0 : i32
    %c0_i32_0 = arith.constant 0 : i32
    %c0_i32_1 = arith.constant 0 : i32
    return %c0_i32, %c0_i32_0 : i32, i32
  }
  func.func @transform_3(%arg0: i32, %arg1: i32) -> (i32, i32) {
    %c0_i32 = arith.constant 0 : i32
    %c0_i32_0 = arith.constant 0 : i32
    return %c0_i32, %arg1 : i32, i32
  }
  func.func @transform_4(%arg0: i32, %arg1: i32) -> (i32, i32) {
    %c0_i32 = arith.constant 0 : i32
    %c0_i32_0 = arith.constant 0 : i32
    return %c0_i32, %arg1 : i32, i32
  }
  func.func @transform_5(%arg0: i32, %arg1: i32) -> (i32, i32) {
    %c0_i32 = arith.constant 0 : i32
    return %arg0, %arg1 : i32, i32
  }
}

</mosaic_0001>

<bundles_post_ra>
// kernel: tpu_custom_call.1
= control target key start
LH: loop header
LB: loop body
LE: loop exit
PB: predicated region body
PF: predicated region fallthrough
CT: control target
= control target key end

     0   :  { %10 = vsyncpa [#allocation4], 0  ;;  %s1129_s0 = inlined_call_operand.hbm [shape: f32[16,128], index: 0, kind: input, shape index: {}]   ;;  %s1130_s1 = inlined_call_operand.vmem [shape: f32[1,128], index: 1, kind: input, shape index: {}]   ;;  %s1131_s2 = inlined_call_operand.vmem [shape: f32[1,128], index: 2, kind: input, shape index: {}]   ;;  %s1132_s3 = inlined_call_operand.hbm [shape: bf16[128,128], index: 3, kind: input, shape index: {}]   ;;  %s1133_s4 = inlined_call_operand.vmem [shape: f32[1,128], index: 4, kind: input, shape index: {}]   ;;  %s1134_s5 = inlined_call_operand.hbm [shape: f32[16,128], index: 5, kind: output, shape index: {}]  }
   0x1   :  { %12 = vsyncpa [#allocation4 + $0x1], 0 }
   0x2   :  { %13 = vsyncpa [#allocation7], 0 }
   0x3   :  { %14 = vsyncpa [#allocation5], 0 }
   0x4   :  { %16 = vsyncpa [#allocation5 + $0x1], 0  ;;  %s897_s18 = smov 0   ;;  %s899_s19 = smov 0  }
   0x5   :  { %s901_s20 = smov 0   ;;  %s903_s21 = smov 0  }
   0x6   :  { %s905_s22 = smov 0   ;;  %s907_s23 = smov 0  }
   0x7 LB: > { %s569_s24 = sadd.s32 4294967295, %s858_s23   ;;  %s570_s25 = sadd.s32 4294967294, %s858_s23   ;;  %s858_s23 = sphi %s907_s23, %s22_s23   ;;  %s854_s22 = sphi %s905_s22, %s1158_s22   ;;  %s850_s21 = sphi %s903_s21, %s1157_s21   ;;  %s846_s20 = sphi %s901_s20, %s1156_s20   ;;  %s842_s19 = sphi %s899_s19, %s1155_s19   ;;  %s838_s18 = sphi %s897_s18, %s1154_s18  }
   0x8   : > { %p54_p0 = scmp.ne.s32.totalorder %s842_s19, %s838_s18  ;;  %p931_p1 = scmp.eq.s32.totalorder %s569_s24, 0 }
   0x9   : > { %p935_p2 = scmp.eq.s32.totalorder %s569_s24, 1  ;;  %p180_p3 = scmp.eq.s32.totalorder %s570_s25, 1 }
   0xa   : > { %s1139_s26 = scalar_select %p931_p1, 1, 0 }
   0xb   : > { %s1140_s27 = scalar_select %p935_p2, 1, 0 }
   0xc   : > { %p941_p4 = por %p931_p1, %p54_p0  ;;  %p571_p5 = scmp.ge.s32.totalorder %s858_s23, 1 }
   0xd   : > { %p946_p6 = por %p180_p3, %p54_p0  ;;  %p187_p7 = scmp.lt.s32.totalorder %s858_s23, 3 }
   0xe   : > { %s1141_s28 = scalar_select %p941_p4, 1, 0 }
   0xf   : > { %s1142_s29 = scalar_select %p946_p6, 1, 0 }
  0x10   : > { %p951_p8 = pnand %p571_p5, %p187_p7  ;;  %s860_s6 = smov [#allocation6]  }
  0x11   : > { %s207_s7 = sshll.u32 %s860_s6, 4  ;;  %s34_s9 = sadd.s32 1, %s854_s22  ;;  %s208_s7 = int_to_ptr.vmem [resolvable:$true] %s207_s7 }
  0x12   : > { %s1143_s30 = scalar_select %p951_p8, 1, 0 }
  0x13   : > { %p633_p9 = pneg %p951_p8  ;;  %s714_s12 = scalar_lea.hbm %s1132_s3, 1024 }
  0x14   : > { %p715_p12 = scmp.ne.s32.totalorder %s1132_s3, %s714_s12  ;;  %p721_p5 = scmp.lt.u32.totalorder %s714_s12, %s1132_s3 }
  0x15   : > { %p960_p11 = pnand %p633_p9, %p931_p1 }
  0x17   : > { %p716_p13 = pneg %p960_p11 }
  0x19   : > { %p717_p0 = pnand %p716_p13, %p715_p12 }
  0x1b   : > { %p718_p3 = pneg %p717_p0 }
  0x1d   : > { %p723_p7 = pnand %p721_p5, %p718_p3 }
  0x1f   : > { %726 = shalt.err (!%p723_p7)
}
  0x20   : > { %s727_s17 = scalar_lea.vmem %s208_s7, 1024  ;;  %p735_p1 = scmp.lt.s32.totalorder %s208_s7, %s208_s7 }
  0x21   : > { %p728_p9 = scmp.ne.s32.totalorder %s208_s7, %s727_s17  ;;  %p736_p4 = scmp.lt.s32.totalorder %s727_s17, %s727_s17 }
  0x23   : > { %p730_p10 = pnand %p728_p9, %p716_p13  ;;  %p737_p8 = por %p736_p4, %p735_p1 }
  0x25   : > { %p731_p6 = pneg %p730_p10 }
  0x27   : > { %p738_p2 = pnand %p737_p8, %p731_p6 }
  0x29   : > { %741 = shalt.err (!%p738_p2)
}
  0x2a   : > { %s861_s24 = smov 64   ;;  %s862_s25 = smov 4  }
  0x2b   : > { %636 = dma.hbm_to_vmem [thread:$0]  (!%p960_p11), %s1132_s3, 1024, %s208_s7, [#allocation7], %s861_s24, %s861_s24, %s862_s25  }
  0x2c   : > { %p36_p1 = scmp.ge.s32.totalorder %s34_s9, 2  ;;  %s41_s11 = sadd.s32 1, %s846_s20 }
  0x2d   : > { %p48_p2 = scmp.ne.s32.totalorder %s846_s20, %s842_s19  ;;  %p49_p4 = scmp.eq.s32.totalorder %s858_s23, 0 }
  0x2e   : > { %s1160_s9 = smov (%p36_p1, %s34_s9), 0  ;;  %p1146_p8 = scmp.ne.s32.totalorder %s1140_s27, 0 }
  0x2f   : > { %p987_p6 = por %p49_p4, %p48_p2  ;;  %s38_s8 = ssub.s32 %s854_s22, %s1160_s9 }
  0x30   : > { %p993_p10 = por %p1146_p8, %p48_p2  ;;  %p646_p12 = scmp.lt.s32.totalorder %s858_s23, 2 }
  0x31   : > { %p39_p11 = scmp.eq.s32.totalorder %s38_s8, 0  ;;  %s227_s7 = sand.u32 1, %s846_s20  }
  0x32   : > { %s575_s14 = sshll.u32 %s227_s7, 3  ;;  %s576_s16 = sshll.u32 %s854_s22, 7 }
  0x33   : > { %s1002_s15 = scalar_select %p39_p11, %s846_s20, %s41_s11  }
  0x34   : > { %s1008_s25 = scalar_lea.hbm %s1129_s0, %s576_s16  ;;  %s231_s27 = scalar_lea.vmem [#allocation3], %s575_s14 }
  0x35   : > { %s238_s6 = sshll.u32 %s231_s27, 4  ;;  %p1014_p13 = pnand %p646_p12, %p987_p6  ;;  %s1010_s6 = int_to_ptr.vmem [resolvable:$true] %s238_s6 }
  0x36   : > { %s228_s11 = scalar_lea.sflag [#allocation4], %s227_s7  ;;  %s742_s8 = scalar_lea.hbm %s1008_s25, 128 }
  0x37   : > { %p743_p0 = scmp.ne.s32.totalorder %s1008_s25, %s742_s8  ;;  %p744_p3 = pneg %p1014_p13 }
  0x38   : > { %s747_s17 = scalar_lea.hbm %s1129_s0, 256  ;;  %p748_p9 = scmp.lt.u32.totalorder %s1008_s25, %s1129_s0 }
  0x39   : > { %p745_p5 = pnand %p744_p3, %p743_p0  ;;  %p749_p1 = scmp.lt.u32.totalorder %s747_s17, %s742_s8 }
  0x3a   : > { %p751_p4 = scmp.lt.u32.totalorder %s742_s8, %s1008_s25 }
  0x3b   : > { %p746_p7 = pneg %p745_p5  ;;  %p750_p2 = por %p749_p1, %p748_p9 }
  0x3d   : > { %p752_p6 = por %p751_p4, %p750_p2 }
  0x3f   : > { %p753_p8 = pnand %p752_p6, %p746_p7 }
  0x41   : > { %756 = shalt.err (!%p753_p8)
}
  0x42   : > { %s757_s7 = scalar_lea.vmem %s1010_s6, 128  ;;  %s863_s27 = smov [#allocation3]  }
  0x43   : > { %p758_p12 = scmp.ne.s32.totalorder %s1010_s6, %s757_s7  ;;  %s762_s14 = sshll.u32 %s863_s27, 4  ;;  %s763_s14 = int_to_ptr.vmem [resolvable:$false] %s762_s14 }
  0x44   : > { %s764_s16 = scalar_lea.vmem %s763_s14, 256  ;;  %p765_p5 = scmp.lt.s32.totalorder %s1010_s6, %s763_s14 }
  0x45   : > { %p760_p11 = pnand %p758_p12, %p744_p3  ;;  %p766_p9 = scmp.lt.s32.totalorder %s764_s16, %s757_s7 }
  0x47   : > { %p761_p0 = pneg %p760_p11  ;;  %p767_p1 = por %p766_p9, %p765_p5 }
  0x49   : > { %p768_p2 = pnand %p767_p1, %p761_p0 }
  0x4b   : > { %771 = shalt.err (!%p768_p2)
}
  0x4c   : > { %640 = dma.hbm_to_vmem [thread:$0]  (!%p1014_p13), %s1008_s25, 128, %s1010_s6, %s228_s11  }
  0x4d   : > { %p1149_p7 = scmp.ne.s32.totalorder %s1143_s30, 0 }
  0x4e   : > { %s1046_s8 = sand.u32 (!%p1149_p7), 1, %s842_s19   ;;  %p1150_p3 = scmp.ne.s32.totalorder (!%p1149_p7), %s1141_s28, 0 }
  0x4f   : > { %247 = sbr.rel (%p1149_p7) target bundleno = 658 (0x292), region = 40  ;;  %s578_s17 = sshll.u32 (!%p1149_p7), %s1046_s8, 3 }
  0x50   : > { %s250_s12 = scalar_lea.sflag (!%p1149_p7), [#allocation4], %s1046_s8  ;;  %s253_s24 = scalar_lea.vmem (!%p1149_p7), [#allocation3], %s578_s17 }
  0x56   : > { %825 = dma.done.wait (%p1150_p3), %s250_s12, 128  }
  0x57   : > { %827 = vsyncadd (%p1150_p3), %s250_s12, 4294967168  ;;  %p1151_p13 = scmp.ne.s32.totalorder %s1139_s26, 0 }
  0x59   : > { %829 = dma.done.wait (%p1151_p13), [#allocation7], 1024  }
  0x5a   : > { %831 = vsyncadd (%p1151_p13), [#allocation7], 4294966272  ;;  %v1060_v0 = vld [vmem:[%s253_s24] sm:$0xff]  ;;  %v302_v1 = vlaneseq  ;;  %v702_v8 = vld [vmem:[#allocation6] sm:$0xff]   ;;  %v864_v9 = vmov 0.0   ;;  %vm865_vm1 = vmmov 0  }
  0x5b   : > { %298 = vadd.xlane.f32.xlu0 %v1060_v0  ;;  %605 = vmatprep.subr.bf16.mxu0 %v864_v9  ;;  %v703_v10 = vld [vmem:[#allocation6 + $0x8] sm:$0xff]   ;;  %v704_v11 = vld [vmem:[#allocation6 + $0x10] sm:$0xff]   ;;  %v705_v12 = vld [vmem:[#allocation6 + $0x18] sm:$0xff]   ;;  %s593_s11 = sshll.u32 %s850_s21, 7  ;;  %s286_s7 = scalar_lea.vmem [#allocation8], %s578_s17 }
  0x5c   : > { %v303_v2 = vand.u32 127, %v302_v1  ;;  %606 = vmatpush3.bf16.msra.mxu0 %v702_v8  ;;  %v706_v13 = vld [vmem:[#allocation6 + $0x20] sm:$0xff]   ;;  %v707_v14 = vld [vmem:[#allocation6 + $0x28] sm:$0xff]   ;;  %v708_v15 = vld [vmem:[#allocation6 + $0x30] sm:$0xff]   ;;  %621 = vmatprep.mubr.msk.bf16.mxu0 %vm865_vm1, %v864_v9  ;;  %s466_s27 = sshll.u32 %s286_s7, 4  ;;  %s1080_s12 = scalar_lea.hbm %s1134_s5, %s593_s11  ;;  %s1082_s27 = int_to_ptr.vmem [resolvable:$true] %s466_s27 }
  0x5d   : > { %607 = vmatprep.subr.bf16.mxu0 %v864_v9  ;;  %v709_v16 = vld [vmem:[#allocation6 + $0x38] sm:$0xff]   ;;  %v581_v26 = vld [vmem:[%s1130_s1] ss:$0 sm:$0xff]  ;;  %s452_s21 = scalar_lea.sflag [#allocation5], %s1046_s8  ;;  %s772_s17 = scalar_lea.vmem %s1082_s27, 128 }
  0x5e   : > { %vm304_vm0 = vcmp.lt.s32.totalorder %v303_v2, 32  ;;  %v582_v28 = vld [vmem:[%s1131_s2] ss:$0 sm:$0xff]  ;;  %p773_p4 = scmp.ne.s32.totalorder %s1082_s27, %s772_s17  ;;  %s866_s24 = smov [#allocation8]  }
  0x5f   : > { %v583_v33 = vld [vmem:[%s1133_s4] ss:$0 sm:$0xff]  ;;  %s776_s26 = sshll.u32 %s866_s24, 4  ;;  %s777_s26 = int_to_ptr.vmem [resolvable:$false] %s776_s26 }
  0x60   : > { %608 = vmatpush3.bf16.msra.mxu0 %v703_v10  ;;  %p774_p6 = pnand %p773_p4, %p993_p10  ;;  %s778_s28 = scalar_lea.vmem %s777_s26, 256 }
  0x61   : > { %609 = vmatprep.subr.bf16.mxu0 %v864_v9  ;;  %p779_p12 = scmp.lt.s32.totalorder %s1082_s27, %s777_s26  ;;  %p780_p11 = scmp.lt.s32.totalorder %s778_s28, %s772_s17 }
  0x62   : > { %p775_p8 = pneg %p774_p6 }
  0x63   : > { %p781_p0 = por %p780_p11, %p779_p12 }
  0x64   : > { %610 = vmatpush3.bf16.msra.mxu0 %v704_v11 }
  0x65   : > { %611 = vmatprep.subr.bf16.mxu0 %v864_v9  ;;  %p782_p5 = pnand %p781_p0, %p775_p8 }
  0x68   : > { %612 = vmatpush3.bf16.msra.mxu0 %v705_v12 }
  0x69   : > { %613 = vmatprep.subr.bf16.mxu0 %v864_v9 }
  0x6c   : > { %614 = vmatpush3.bf16.msra.mxu0 %v706_v13 }
  0x6d   : > { %615 = vmatprep.subr.bf16.mxu0 %v864_v9 }
  0x70   : > { %616 = vmatpush3.bf16.msra.mxu0 %v707_v14 }
  0x71   : > { %617 = vmatprep.subr.bf16.mxu0 %v864_v9 }
  0x74   : > { %618 = vmatpush3.bf16.msra.mxu0 %v708_v15 }
  0x75   : > { %619 = vmatprep.subr.bf16.mxu0 %v864_v9 }
  0x78   : > { %620 = vmatpush3.bf16.msra.mxu0 %v709_v16 }
  0xe8   : > { %v299_v3 = vpop.xlane.xlu0 %298 }
  0xe9   : > { %v300_v4 = vmul.f32 0.03125, %v299_v3 }
  0xeb   : > { %v301_v5 = vsub.f32 %v1060_v0, %v300_v4 }
  0xed   : > { %v305_v6 = vsel %vm304_vm0, %v301_v5, 0.0 }
  0xee   : > { %v306_v7 = vmul.f32 %v305_v6, %v305_v6 }
  0xf0   : > { %307 = vadd.xlane.f32.xlu0 %v306_v7 }
 0x17d   : > { %v308_v17 = vpop.xlane.xlu0 %307 }
 0x17e   : > { %v309_v18 = vmul.f32 0.032258064, %v308_v17 }
 0x180   : > { %710 = vrsqrt.f32 %v309_v18  ;;  %vm312_vm2 = vcmp.eq.f32.partialorder %v309_v18, inf  ;;  %v315_v21 = vand.u32 2147483648, %v309_v18  ;;  %vm314_vm3 = vcmp.eq.f32.partialorder %v309_v18, 0.0 }
 0x18a   : > { %v711_v19 = vpop.eup %710 }
 0x18b   : > { %v311_v20 = vmul.f32 %v711_v19, %v309_v18 }
 0x18d   : > { %v313_v22 = vsel %vm312_vm2, %v309_v18, %v311_v20 }
 0x18e   : > { %v316_v23 = vsel %vm314_vm3, %v315_v21, %v313_v22 }
 0x18f   : > { %v317_v24 = vadd.f32 1e-06, %v316_v23 }
 0x191   : > { %712 = vrcp.f32 %v317_v24 }
 0x19b   : > { %v713_v25 = vpop.eup %712 }
 0x19c   : > { %v319_v27 = vmul.f32 %v713_v25, %v301_v5 }
 0x19e   : > { %v326_v29 = vmul.f32 %v581_v26, %v319_v27 }
 0x1a0   : > { %v333_v30 = vadd.f32 %v582_v28, %v326_v29 }
 0x1a2   : > { %v334_v31 = vpack.c.bf16 %v333_v30, %v333_v30 }
 0x1a4   : > { %335 = vst [vmem:[#allocation2] sm:$0xf] %v334_v31 }
 0x1ab   : > { %v336_v32 = vld [vmem:[#allocation2] sm:$0xf] }
 0x1ac   : > { %622 = vmatmul.mubr.bf16.vlgmr.msra.gmra.mrb[0].mxu0 %v336_v32 }
 0x27f   : > { %v442_v34 = vpop.f32.mrb[0].mxu0 }
 0x280   : > { %v443_v35 = vadd.f32 %v583_v33, %v442_v34  ;;  %v623_v36 = vpop.f32.mrb[1].mxu0 }
 0x281   : > { %v445_v37 = vpop.f32.mrb[2].mxu0 }
 0x282   : > { %v449_v38 = vadd.f32 %v443_v35, %v1060_v0  ;;  %v624_v39 = vpop.f32.mrb[3].mxu0 }
 0x284   : > { %450 = vst [vmem:[%s286_s7] sm:$0xff] %v449_v38 }
 0x285   : > { %785 = shalt.err (!%p782_p5)
}
 0x286   : > { %s786_s8 = scalar_lea.hbm %s1080_s12, 128  ;;  %s790_s6 = scalar_lea.hbm %s1134_s5, 256 }
 0x287   : > { %p787_p9 = scmp.ne.s32.totalorder %s1080_s12, %s786_s8  ;;  %p791_p7 = scmp.lt.u32.totalorder %s1080_s12, %s1134_s5 }
 0x288   : > { %p792_p3 = scmp.lt.u32.totalorder %s790_s6, %s786_s8  ;;  %p794_p4 = scmp.lt.u32.totalorder %s786_s8, %s1080_s12 }
 0x289   : > { %p788_p1 = pnand %p787_p9, %p993_p10 }
 0x28a   : > { %p793_p13 = por %p792_p3, %p791_p7 }
 0x28b   : > { %p789_p2 = pneg %p788_p1 }
 0x28c   : > { %p795_p6 = por %p794_p4, %p793_p13 }
 0x28e   : > { %p796_p8 = pnand %p795_p6, %p789_p2 }
 0x290   : > { %799 = shalt.err (!%p796_p8)
}
 0x291   : > { %631 = dma.vmem_to_hbm [thread:$0]  (%p993_p10), %s1082_s27, 128, %s1080_s12, %s452_s21  }
 0x292 PF: > { %s478_s7 = sand.u32 1, %s838_s18   ;;  %p1152_p12 = scmp.ne.s32.totalorder %s1142_s29, 0 }
 0x293   : > { %p1153_p11 = scmp.ge.s32.totalorder %s858_s23, 2  ;;  %s479_s14 = scalar_lea.sflag [#allocation5], %s478_s7 }
 0x295   : > { %p642_p0 = pnand %p1153_p11, %p1152_p12 }
 0x297   : > { %833 = dma.done.wait (!%p642_p0), %s479_s14, 128  }
 0x298   : > { %835 = vsyncadd (!%p642_p0), %s479_s14, 4294967168  ;;  %s22_s23 = sadd.s32 1, %s858_s23   ;;  %s1154_s18 = smov %s842_s19 }
 0x299   : > { %p19_p5 = scmp.ge.s32.totalorder %s22_s23, 4   ;;  %s1155_s19 = smov %s846_s20 }
 0x29a   : > { %s1156_s20 = smov %s1002_s15  ;;  %s1157_s21 = smov %s854_s22 }
 0x29b   : > { %s1158_s22 = smov %s1160_s9  ;;  %21 = sbr.rel (!%p19_p5) target bundleno = 7 (0x7), region = 97 }
 0x2a2   :  { %484 = vsyncpa [#allocation4], 1 }
 0x2a3   :  { %486 = vsyncpa [#allocation4 + $0x1], 1 }
 0x2a4   :  { %487 = vsyncpa [#allocation7], 1 }
 0x2a5   :  { %488 = vsyncpa [#allocation5], 1 }
 0x2a6   :  { %490 = vsyncpa [#allocation5 + $0x1], 1 }

</bundles_post_ra>
